<compile_context>
chip_gen: v5e
topology: v5e:2x2
jax: 0.10.0
libtpu: 0.0.40
codegen_flags: <defaults>
</compile_context>

<pallas_src>
import functools

import jax
import jax.numpy as jnp
from jax import lax
from jax.experimental import pallas as pl
from jax.experimental.pallas import tpu as pltpu


# phase index along the packed 4C axis, keyed by (row parity, col parity)
_NATURAL_PHASE = {(0, 0): 0, (0, 1): 1, (1, 0): 2, (1, 1): 3}   # [ee, eo, oe, oo]
_TIGHT_PHASE = {(1, 0): 0, (0, 0): 1, (0, 1): 2, (1, 1): 3}     # [oe, ee, eo, oo]
_TIGHT_PERM = (2, 0, 1, 3)   # natural phase placed at each tight slot
_TAIL = 16                   # zero rows appended so the +1 shifts never go OOB


def _round_up(x, m):
    return (x + m - 1) // m * m


def _pack_weights(w_oihw, phase_idx):
    """OIHW (C, C, 3, 3) -> (4, 4C, C): one (4C, C) slab per 2x2 offset."""
    C = w_oihw.shape[0]
    wb = jnp.zeros((4, 4 * C, C), jnp.float32)
    for dy in range(3):
        for dx in range(3):
            o = 2 * (dy // 2) + (dx // 2)        # which neighbouring s2d pixel
            p = phase_idx[(dy % 2, dx % 2)]      # which phase block inside 4C
            wb = wb.at[o, p * C:(p + 1) * C, :].set(
                jnp.transpose(w_oihw[:, :, dy, dx]))    # (C_in, C_out)
    return wb


def _vmem_bytes(tile_rows, wp, c4, C, in_isz, out_isz):
    """Per-step VMEM footprint estimate (weights single-buffered)."""
    t = tile_rows * wp
    win = t + wp + _TAIL
    return (2 * win * c4 * in_isz      # input window, double-buffered
            + 4 * c4 * C * in_isz      # packed weights (single copy in VMEM)
            + 2 * t * C * out_isz      # output block, double-buffered
            + t * C * 4                # f32 accumulator (live value)
            + 2 * t * c4 * in_isz)     # headroom for shifted-operand copies


def _pick_tile_rows(h_out, wp, c4, C, in_isz, out_isz, budget):
    best = 1
    for tr in range(1, max(h_out, 1) + 1):
        if _vmem_bytes(tr, wp, c4, C, in_isz, out_isz) <= budget:
            best = tr
    return best


def _downsample_kernel(x_ref, w_ref, b_ref, o_ref, *, t, wp, k_ranges):
    # x_ref: (t + wp + _TAIL, 4C)  packed s2d window (compute dtype)
    # w_ref: (4, 4C, C)            per-offset packed weights (compute dtype)
    # b_ref: (1, C)                bias, f32
    # o_ref: (t, C)                full padded output rows for this tile
    shifts = (0, 1, wp, wp + 1)    # flattened s2d-pixel offset per 2x2 offset
    acc = None
    for o in range(4):
        ks, ke = k_ranges[o]
        s = shifts[o]
        y = jnp.dot(x_ref[s:s + t, ks:ke], w_ref[o, ks:ke, :],
                    preferred_element_type=jnp.float32)       # (t, C) f32
        acc = y if acc is None else acc + y                   # single store below
    o_ref[...] = (acc + b_ref[...]).astype(o_ref.dtype)


def downsample_block(x_nchw, w_oihw, bias, *, tile_rows=None,
                     compute_dtype=jnp.bfloat16):
    """Forward pass of DownSampleBlock.

    x_nchw: (N, C, H, W);  w_oihw: (C, C, 3, 3) PyTorch conv weight;
    bias: (C,).  Returns (N, C, H_out, W_out), H_out = (H-2)//2 + 1.
    """
    N, C, H, W = x_nchw.shape
    assert w_oihw.shape == (C, C, 3, 3) and bias.shape == (C,)
    assert H >= 2 and W >= 2
    h_out = (H - 2) // 2 + 1
    w_out = (W - 2) // 2 + 1
    c4 = 4 * C

    # K ranges: tight (9C^2 MACs/pixel) only when the K starts are lane-aligned.
    tight_k = (C % 128 == 0)
    phase_idx = _TIGHT_PHASE if tight_k else _NATURAL_PHASE
    if tight_k:
        k_ranges = ((0, 4 * C), (0, 2 * C), (C, 3 * C), (C, 2 * C))
    else:
        k_ranges = ((0, c4),) * 4     # zero weight rows outside each offset's taps

    in_isz = jnp.dtype(compute_dtype).itemsize
    out_isz = jnp.dtype(x_nchw.dtype).itemsize

    # s2d width incl. the halo column; multiple of 16 keeps bf16 (16,128)
    # sublane packing aligned for the shifted reads and the output rows.
    wp = _round_up(w_out + 1, 16)

    # ---- generation-aware VMEM sizing -------------------------------------
    try:
        vmem_cap = int(pltpu.get_tpu_info().vmem_capacity_bytes)
    except Exception:
        vmem_cap = 64 * 2 ** 20       # v7x per-TC physical, conservative default
    budget = int(vmem_cap * 0.6)
    if tile_rows is None:
        tile_rows = _pick_tile_rows(h_out, wp, c4, C, in_isz, out_isz, budget)
        # v7x megacore: keep >= 2 grid steps so both TensorCores get work.
        if N * pl.cdiv(h_out, tile_rows) < 2 and h_out > 1:
            tile_rows = pl.cdiv(h_out, 2)
    tile_rows = max(int(tile_rows), 1)
    n_tiles = pl.cdiv(h_out, tile_rows)
    h_pad = n_tiles * tile_rows                  # output rows incl. cropped tail
    t = tile_rows * wp                           # flattened s2d pixels per tile
    win = t + wp + _TAIL                         # rows per overlapping window

    est = _vmem_bytes(tile_rows, wp, c4, C, in_isz, out_isz)
    vmem_limit = int(min(max(budget, int(est * 1.25)), int(vmem_cap * 0.9)))

    # ---- layout glue (single pass over the input) --------------------------
    # NCHW -> NHWC, zero-pad, 2x2 space-to-depth, phase ordering, overlapping
    # per-tile windows.  The zero padding is wider than PyTorch's (0,1,0,1);
    # invariant: valid outputs only read padded rows <= H and cols <= W, so the
    # extra zero rows/cols feed nothing but the cropped pad outputs.
    r = h_pad + 1                                 # s2d rows incl. halo row
    x = x_nchw.astype(compute_dtype)              # cast first: halves glue traffic
    x = jnp.transpose(x, (0, 2, 3, 1))            # NHWC
    x = jnp.pad(x, ((0, 0), (0, 2 * r - H), (0, 2 * wp - W), (0, 0)))
    s = x.reshape(N, r, 2, wp, 2, C).transpose(0, 1, 3, 2, 4, 5)  # (N,r,wp,rp,cp,C)
    s = s.reshape(N, r, wp, 4, C)
    if tight_k:
        s = s[:, :, :, jnp.array(_TIGHT_PERM), :]  # phase order [oe, ee, eo, oo]
    x_flat = s.reshape(N, r * wp, c4)
    x_flat = jnp.pad(x_flat, ((0, 0), (0, _TAIL), (0, 0)))
    starts = jnp.arange(n_tiles, dtype=jnp.int32) * t
    idx = starts[:, None] + jnp.arange(win, dtype=jnp.int32)[None, :]
    x_win = x_flat[:, idx, :]                     # (N, n_tiles, win, 4C) overlapping

    wb = _pack_weights(w_oihw, phase_idx).astype(compute_dtype)   # (4, 4C, C)
    b2 = bias.reshape(1, C).astype(jnp.float32)

    kernel = functools.partial(_downsample_kernel, t=t, wp=wp, k_ranges=k_ranges)

    grid_spec = pltpu.PrefetchScalarGridSpec(
        num_scalar_prefetch=0,
        grid=(N, n_tiles),
        in_specs=[
            # one overlapping window per grid step (no halo re-read, no slab join)
            pl.BlockSpec((None, None, win, c4), lambda n, h: (n, h, 0, 0)),
            # constant operands: whole-array VMEM residents (no double-buffering)
            pl.BlockSpec(memory_space=pltpu.MemorySpace.VMEM),
            pl.BlockSpec(memory_space=pltpu.MemorySpace.VMEM),
        ],
        out_specs=pl.BlockSpec((None, None, t, C), lambda n, h: (n, h, 0, 0)),
    )

    out = pl.pallas_call(
        kernel,
        out_shape=jax.ShapeDtypeStruct((N, n_tiles, t, C), x_nchw.dtype),
        grid_spec=grid_spec,
        compiler_params=pltpu.CompilerParams(
            dimension_semantics=("parallel", "parallel"),
            vmem_limit_bytes=vmem_limit),
    )(x_win, wb, b2)

    # Crop pad rows/columns, fused with the NHWC -> NCHW transpose.
    out = out.reshape(N, h_pad, wp, C)[:, :h_out, :w_out, :]
    return jnp.transpose(out, (0, 3, 1, 2))


if __name__ == "__main__":
    key = jax.random.PRNGKey(0)
    k_x, k_w, k_b, k_x2, k_w2, k_b2 = jax.random.split(key, 6)

    def torch_ref(x, w_oihw, bias):
        # F.pad(x, (0,1,0,1)) then Conv2d(C, C, 3, stride=2, padding=0)
        x_nhwc = jnp.transpose(x, (0, 2, 3, 1))
        x_pad = jnp.pad(x_nhwc, ((0, 0), (0, 1), (0, 1), (0, 0)))
        w_hwio = jnp.transpose(w_oihw, (2, 3, 1, 0))
        y = lax.conv_general_dilated(
            x_pad, w_hwio, window_strides=(2, 2), padding="VALID",
            dimension_numbers=("NHWC", "HWIO", "NHWC")) + bias
        return jnp.transpose(y, (0, 3, 1, 2))

    # --- case 1: C=4, f32 compute, tile_rows=3 (exercises the padded tail) ---
    N, C, H, W = 2, 4, 16, 16
    x = jax.random.normal(k_x, (N, C, H, W), dtype=jnp.float32)
    fan_in = C * 9
    bound = 1.0 / (fan_in ** 0.5)
    w = jax.random.uniform(k_w, (C, C, 3, 3), jnp.float32, -bound, bound)
    b = jax.random.uniform(k_b, (C,), jnp.float32, -bound, bound)
    ref = torch_ref(x, w, b)

    out = jax.block_until_ready(
        downsample_block(x, w, b, tile_rows=3, compute_dtype=jnp.float32))
    assert out.shape == (N, C, H // 2, W // 2), out.shape
    assert jnp.allclose(out, ref, atol=1e-4, rtol=1e-4), \
        float(jnp.max(jnp.abs(out - ref)))

    # --- case 2: default bf16 operands (f32 accumulation), auto tile_rows ----
    out_bf16 = jax.block_until_ready(downsample_block(x, w, b))
    assert out_bf16.shape == (N, C, H // 2, W // 2), out_bf16.shape
    assert jnp.allclose(out_bf16, ref, atol=5e-2, rtol=5e-2), \
        float(jnp.max(jnp.abs(out_bf16 - ref)))

    # --- case 3: C=128 exercises the lane-aligned tight-K (9C^2 MAC) path ----
    N2, C2, H2, W2 = 1, 128, 8, 8
    x2 = jax.random.normal(k_x2, (N2, C2, H2, W2), dtype=jnp.float32)
    fan_in2 = C2 * 9
    bound2 = 1.0 / (fan_in2 ** 0.5)
    w2 = jax.random.uniform(k_w2, (C2, C2, 3, 3), jnp.float32, -bound2, bound2)
    b2 = jax.random.uniform(k_b2, (C2,), jnp.float32, -bound2, bound2)
    ref2 = torch_ref(x2, w2, b2)

    out2 = jax.block_until_ready(downsample_block(x2, w2, b2))
    assert out2.shape == (N2, C2, H2 // 2, W2 // 2), out2.shape
    assert jnp.allclose(out2, ref2, atol=5e-2, rtol=5e-2), \
        float(jnp.max(jnp.abs(out2 - ref2)))

    print("KERNEL_OK")
</pallas_src>

<mosaic_0001>
module attributes {stable_mosaic.version = 11 : i64} {
  func.func @_downsample_kernel(%arg0: i32, %arg1: i32, %arg2: memref<1x1x80x16xf32, #tpu.memory_space<vmem>>, %arg3: memref<4x16x4xf32, #tpu.memory_space<vmem>>, %arg4: memref<1x4xf32, #tpu.memory_space<vmem>>, %arg5: memref<1x1x48x4xf32, #tpu.memory_space<vmem>>) attributes {dimension_semantics = [#tpu.dimension_semantics<parallel>, #tpu.dimension_semantics<parallel>], iteration_bounds = array<i64: 2, 3>, scalar_prefetch = 0 : i64, scratch_operands = 0 : i64, tpu.core_type = #tpu.core_type<tc>, window_params = [{transform_indices = @transform_0, window_bounds = array<i64: 1, 1, 80, 16>}, {pipeline_mode = #tpu.pipeline_mode<synchronous>, transform_indices = @transform_1, window_bounds = array<i64: 4, 16, 4>}, {pipeline_mode = #tpu.pipeline_mode<synchronous>, transform_indices = @transform_2, window_bounds = array<i64: 1, 4>}, {transform_indices = @transform_3, window_bounds = array<i64: 1, 1, 48, 4>}]} {
    %c0 = arith.constant 0 : index
    %c0_0 = arith.constant 0 : index
    %c0_1 = arith.constant 0 : index
    %c0_2 = arith.constant 0 : index
    %0 = vector.load %arg2[%c0, %c0_0, %c0_1, %c0_2] : memref<1x1x80x16xf32, #tpu.memory_space<vmem>>, vector<1x1x48x16xf32>
    %1 = vector.shape_cast %0 : vector<1x1x48x16xf32> to vector<48x16xf32>
    %c0_3 = arith.constant 0 : index
    %c0_4 = arith.constant 0 : index
    %c0_5 = arith.constant 0 : index
    %2 = vector.load %arg3[%c0_3, %c0_4, %c0_5] : memref<4x16x4xf32, #tpu.memory_space<vmem>>, vector<1x16x4xf32>
    %3 = vector.shape_cast %2 : vector<1x16x4xf32> to vector<16x4xf32>
    %cst = arith.constant dense<0.000000e+00> : vector<48x4xf32>
    %4 = tpu.matmul %1, %3, %cst {dimension_numbers = #tpu.dot_dimension_numbers<[1], [0], [0], [1], [0, 0, 1, 1], [], []>} : vector<48x16xf32>, vector<16x4xf32>, vector<48x4xf32> -> vector<48x4xf32>
    %c0_6 = arith.constant 0 : index
    %c0_7 = arith.constant 0 : index
    %c1 = arith.constant 1 : index
    %c0_8 = arith.constant 0 : index
    %5 = vector.load %arg2[%c0_6, %c0_7, %c1, %c0_8] : memref<1x1x80x16xf32, #tpu.memory_space<vmem>>, vector<1x1x48x16xf32>
    %6 = vector.shape_cast %5 : vector<1x1x48x16xf32> to vector<48x16xf32>
    %c1_9 = arith.constant 1 : index
    %c0_10 = arith.constant 0 : index
    %c0_11 = arith.constant 0 : index
    %7 = vector.load %arg3[%c1_9, %c0_10, %c0_11] : memref<4x16x4xf32, #tpu.memory_space<vmem>>, vector<1x16x4xf32>
    %8 = vector.shape_cast %7 : vector<1x16x4xf32> to vector<16x4xf32>
    %cst_12 = arith.constant dense<0.000000e+00> : vector<48x4xf32>
    %9 = tpu.matmul %6, %8, %cst_12 {dimension_numbers = #tpu.dot_dimension_numbers<[1], [0], [0], [1], [0, 0, 1, 1], [], []>} : vector<48x16xf32>, vector<16x4xf32>, vector<48x4xf32> -> vector<48x4xf32>
    %10 = arith.addf %4, %9 : vector<48x4xf32>
    %c0_13 = arith.constant 0 : index
    %c0_14 = arith.constant 0 : index
    %c16 = arith.constant 16 : index
    %c0_15 = arith.constant 0 : index
    %11 = vector.load %arg2[%c0_13, %c0_14, %c16, %c0_15] : memref<1x1x80x16xf32, #tpu.memory_space<vmem>>, vector<1x1x48x16xf32>
    %12 = vector.shape_cast %11 : vector<1x1x48x16xf32> to vector<48x16xf32>
    %c2 = arith.constant 2 : index
    %c0_16 = arith.constant 0 : index
    %c0_17 = arith.constant 0 : index
    %13 = vector.load %arg3[%c2, %c0_16, %c0_17] : memref<4x16x4xf32, #tpu.memory_space<vmem>>, vector<1x16x4xf32>
    %14 = vector.shape_cast %13 : vector<1x16x4xf32> to vector<16x4xf32>
    %cst_18 = arith.constant dense<0.000000e+00> : vector<48x4xf32>
    %15 = tpu.matmul %12, %14, %cst_18 {dimension_numbers = #tpu.dot_dimension_numbers<[1], [0], [0], [1], [0, 0, 1, 1], [], []>} : vector<48x16xf32>, vector<16x4xf32>, vector<48x4xf32> -> vector<48x4xf32>
    %16 = arith.addf %10, %15 : vector<48x4xf32>
    %c0_19 = arith.constant 0 : index
    %c0_20 = arith.constant 0 : index
    %c17 = arith.constant 17 : index
    %c0_21 = arith.constant 0 : index
    %17 = vector.load %arg2[%c0_19, %c0_20, %c17, %c0_21] : memref<1x1x80x16xf32, #tpu.memory_space<vmem>>, vector<1x1x48x16xf32>
    %18 = vector.shape_cast %17 : vector<1x1x48x16xf32> to vector<48x16xf32>
    %c3 = arith.constant 3 : index
    %c0_22 = arith.constant 0 : index
    %c0_23 = arith.constant 0 : index
    %19 = vector.load %arg3[%c3, %c0_22, %c0_23] : memref<4x16x4xf32, #tpu.memory_space<vmem>>, vector<1x16x4xf32>
    %20 = vector.shape_cast %19 : vector<1x16x4xf32> to vector<16x4xf32>
    %cst_24 = arith.constant dense<0.000000e+00> : vector<48x4xf32>
    %21 = tpu.matmul %18, %20, %cst_24 {dimension_numbers = #tpu.dot_dimension_numbers<[1], [0], [0], [1], [0, 0, 1, 1], [], []>} : vector<48x16xf32>, vector<16x4xf32>, vector<48x4xf32> -> vector<48x4xf32>
    %22 = arith.addf %16, %21 : vector<48x4xf32>
    %c0_25 = arith.constant 0 : index
    %c0_26 = arith.constant 0 : index
    %23 = vector.load %arg4[%c0_25, %c0_26] : memref<1x4xf32, #tpu.memory_space<vmem>>, vector<1x4xf32>
    %24 = vector.broadcast %23 : vector<1x4xf32> to vector<48x4xf32>
    %25 = arith.addf %22, %24 : vector<48x4xf32>
    %c0_27 = arith.constant 0 : index
    %c0_28 = arith.constant 0 : index
    %c0_29 = arith.constant 0 : index
    %c0_30 = arith.constant 0 : index
    %26 = vector.load %arg5[%c0_27, %c0_28, %c0_29, %c0_30] : memref<1x1x48x4xf32, #tpu.memory_space<vmem>>, vector<1x1x48x4xf32>
    %27 = vector.shape_cast %26 : vector<1x1x48x4xf32> to vector<48x4xf32>
    %28 = vector.shape_cast %25 : vector<48x4xf32> to vector<1x1x48x4xf32>
    tpu.vector_store %arg5[%c0_27, %c0_28, %c0_29, %c0_30], %28 {strides = array<i32>} : memref<1x1x48x4xf32, #tpu.memory_space<vmem>>, vector<1x1x48x4xf32>,
    return
  }
  func.func @transform_0(%arg0: i32, %arg1: i32) -> (i32, i32, i32, i32) {
    %c0_i32 = arith.constant 0 : i32
    %c0_i32_0 = arith.constant 0 : i32
    %c0_i32_1 = arith.constant 0 : i32
    return %arg0, %arg1, %c0_i32, %c0_i32_0 : i32, i32, i32, i32
  }
  func.func @transform_1(%arg0: i32, %arg1: i32) -> (i32, i32, i32) {
    %c0_i32 = arith.constant 0 : i32
    %c0_i32_0 = arith.constant 0 : i32
    %c0_i32_1 = arith.constant 0 : i32
    %c0_i32_2 = arith.constant 0 : i32
    return %c0_i32, %c0_i32_0, %c0_i32_1 : i32, i32, i32
  }
  func.func @transform_2(%arg0: i32, %arg1: i32) -> (i32, i32) {
    %c0_i32 = arith.constant 0 : i32
    %c0_i32_0 = arith.constant 0 : i32
    %c0_i32_1 = arith.constant 0 : i32
    return %c0_i32, %c0_i32_0 : i32, i32
  }
  func.func @transform_3(%arg0: i32, %arg1: i32) -> (i32, i32, i32, i32) {
    %c0_i32 = arith.constant 0 : i32
    %c0_i32_0 = arith.constant 0 : i32
    %c0_i32_1 = arith.constant 0 : i32
    return %arg0, %arg1, %c0_i32, %c0_i32_0 : i32, i32, i32, i32
  }
}

</mosaic_0001>

<bundles_post_ra>
// kernel: tpu_custom_call.1
= control target key start
LH: loop header
LB: loop body
LE: loop exit
PB: predicated region body
PF: predicated region fallthrough
CT: control target
= control target key end

     0   :  { %s723_s12 = smov 0   ;;  %s725_s13 = smov 0   ;;  %s868_s0 = inlined_call_operand.vmem [shape: f32[2,3,80,16], index: 0, kind: input, shape index: {}]   ;;  %s869_s1 = inlined_call_operand.vmem [shape: f32[4,16,4], index: 1, kind: input, shape index: {}]   ;;  %s870_s2 = inlined_call_operand.vmem [shape: f32[1,4], index: 2, kind: input, shape index: {}]   ;;  %s871_s3 = inlined_call_operand.vmem [shape: f32[2,3,48,4], index: 3, kind: output, shape index: {}]  }
   0x1   :  { %s727_s14 = smov 0   ;;  %s729_s15 = smov 0  }
   0x2   :  { %s731_s16 = smov 0  }
   0x3 LB: > { %s22_s17 = sadd.s32 1, %s693_s14  ;;  %s25_s18 = sadd.s32 1, %s697_s15  ;;  %s701_s16 = sphi %s731_s16, %s13_s16   ;;  %s697_s15 = sphi %s729_s15, %s875_s15   ;;  %s693_s14 = sphi %s727_s14, %s874_s14   ;;  %s689_s13 = sphi %s725_s13, %s873_s13   ;;  %s685_s12 = sphi %s723_s12, %s872_s12  }
   0x4   : > { %p23_p0 = scmp.ge.s32.totalorder %s22_s17, 3  ;;  %p583_p1 = scmp.ge.s32.totalorder %s701_s16, 1 }
   0x5   : > { %p157_p2 = scmp.lt.s32.totalorder %s701_s16, 7 }
   0x6   : > { %s877_s17 = smov (%p23_p0, %s22_s17), 0  ;;  %s879_s18 = smov (!%p23_p0, %s25_s18), %s697_s15 }
   0x7   : > { %p158_p3 = pnand %p583_p1, %p157_p2  ;;  %p27_p4 = scmp.ge.s32.totalorder %s879_s18, 2 }
   0x8   : > { %p189_p5 = scmp.lt.s32.totalorder (!%p158_p3), %s689_s13, 1  ;;  %p191_p6 = scmp.lt.s32.totalorder (!%p158_p3), %s685_s12, 2 }
   0x9   : > { %s881_s18 = smov (%p27_p4, %s879_s18), 0  ;;  %161 = sbr.rel (%p158_p3) target bundleno = 201 (0xc9), region = 32 }
   0xe   : > { %v601_v0 = vld [vmem:[%s869_s1 + $0x28] sm:$0xff]  ;;  %v600_v1 = vld [vmem:[%s869_s1 + $0x20] sm:$0xff]  ;;  %v609_v2 = vld [vmem:[%s869_s1 + $0x38] sm:$0xff]  ;;  %s883_s13 = smov (!%p189_p5, %s689_s13), 1  ;;  %s885_s12 = smov (!%p191_p6, %s685_s12), 2  ;;  %vm224_vm0 = vcmask 130048  }
   0xf   : > { %372 = vmatpush.msra.mxu2 %v601_v0  ;;  %440 = vmatpush.msra.mxu3 %v609_v2  ;;  %v587_v3 = vld [vmem:[%s869_s1 + $0x18] sm:$0xff]  ;;  %v214_v4 = vld [vmem:[%s869_s1 + $0x8] sm:$0xff]  ;;  %v608_v5 = vld [vmem:[%s869_s1 + $0x30] sm:$0xff]  ;;  %s619_s8 = smul.u32 30, %s883_s13  ;;  %vm477_vm1 = vcmask 31744  }
  0x10   : > { %257 = vmatpush.msra.mxu0 %v587_v3  ;;  %310 = vmatpush.msra.mxu1 %v214_v4  ;;  %v586_v6 = vld [vmem:[%s869_s1 + $0x10] sm:$0xff]  ;;  %v213_v7 = vld [vmem:[%s869_s1] sm:$0xff]  ;;  %s618_s9 = smul.u32 10, %s885_s12 }
  0x11   : > { %373 = vmatpush.msra.mxu2 %v600_v1  ;;  %441 = vmatpush.msra.mxu3 %v608_v5  ;;  %s620_s22 = smul.u32 6, %s885_s12  ;;  %v662_v30 = vld [vmem:[%s870_s2] ss:$0 sm:$0xff] }
  0x12   : > { %258 = vmatpush.msra.mxu0 %v586_v6  ;;  %311 = vmatpush.msra.mxu1 %v213_v7  ;;  %s195_s10 = sadd.s32 %s619_s8, %s618_s9  ;;  %s621_s23 = smul.u32 18, %s883_s13 }
  0x13   : > { %s584_s11 = sshll.u32 %s195_s10, 3 }
  0x14   : > { %s787_s21 = scalar_lea.vmem %s868_s0, %s584_s11  ;;  %s802_s24 = sadd.s32 %s621_s23, %s620_s22 }
  0x15   : > { %v331_v8 = vld [vmem:[%s787_s21 + $0x10] sm:$0xff]  ;;  %v215_v10 = vld [vmem:[%s787_s21 + $0x1] sm:$0xff]  ;;  %v332_v12 = vld [vmem:[%s787_s21 + $0x18] sm:$0xff]  ;;  %s585_s12 = sshll.u32 %s802_s24, 3 }
  0x16   : > { %v399_v9 = vld [vmem:[%s787_s21 + $0x11] sm:$0xff]  ;;  %602 = vmatmul.msk.f32.vlgmr.msra.gmra.mxu2 %vm224_vm0, %v331_v8  ;;  %v207_v11 = vld [vmem:[%s787_s21] sm:$0xff]  ;;  %588 = vmatmul.msk.f32.vlgmr.msra.gmra.mxu0 %vm224_vm0, %v215_v10  ;;  %v216_v14 = vld [vmem:[%s787_s21 + $0x9] sm:$0xff]  ;;  %s839_s28 = scalar_lea.vmem %s871_s3, %s585_s12 }
  0x17   : > { %610 = vmatmul.msk.f32.vlgmr.msra.gmra.mxu3 %vm224_vm0, %v399_v9  ;;  %594 = vmatmul.msk.f32.vlgmr.msra.gmra.mxu1 %vm224_vm0, %v207_v11  ;;  %v400_v13 = vld [vmem:[%s787_s21 + $0x19] sm:$0xff]  ;;  %v208_v15 = vld [vmem:[%s787_s21 + $0x8] sm:$0xff]  ;;  %v335_v20 = vld [vmem:[%s787_s21 + $0x30] sm:$0xff] }
  0x18   : > { %v333_v16 = vld [vmem:[%s787_s21 + $0x20] sm:$0xff]  ;;  %v334_v18 = vld [vmem:[%s787_s21 + $0x28] sm:$0xff]  ;;  %v403_v21 = vld [vmem:[%s787_s21 + $0x31] sm:$0xff] }
  0x19   : > { %v401_v17 = vld [vmem:[%s787_s21 + $0x21] sm:$0xff]  ;;  %v402_v19 = vld [vmem:[%s787_s21 + $0x29] sm:$0xff]  ;;  %v336_v22 = vld [vmem:[%s787_s21 + $0x38] sm:$0xff] }
  0x1a   : > { %v404_v23 = vld [vmem:[%s787_s21 + $0x39] sm:$0xff] }
  0x1e   : > { %603 = vmatmul.msk.f32.gmra.mxu2 %vm224_vm0, %v332_v12  ;;  %589 = vmatmul.msk.f32.gmra.mxu0 %vm224_vm0, %v216_v14 }
  0x1f   : > { %611 = vmatmul.msk.f32.gmra.mxu3 %vm224_vm0, %v400_v13  ;;  %595 = vmatmul.msk.f32.gmra.mxu1 %vm224_vm0, %v208_v15 }
  0x26   : > { %604 = vmatmul.msk.f32.gmra.mxu2 %vm224_vm0, %v333_v16  ;;  %590 = vmatmul.msk.f32.gmra.mxu0 %vm224_vm0, %v399_v9 }
  0x27   : > { %612 = vmatmul.msk.f32.gmra.mxu3 %vm224_vm0, %v401_v17  ;;  %596 = vmatmul.msk.f32.gmra.mxu1 %vm224_vm0, %v331_v8 }
  0x2e   : > { %605 = vmatmul.msk.f32.gmra.mxu2 %vm224_vm0, %v334_v18  ;;  %591 = vmatmul.msk.f32.gmra.mxu0 %vm224_vm0, %v400_v13 }
  0x2f   : > { %613 = vmatmul.msk.f32.gmra.mxu3 %vm224_vm0, %v402_v19  ;;  %597 = vmatmul.msk.f32.gmra.mxu1 %vm224_vm0, %v332_v12 }
  0x36   : > { %606 = vmatmul.msk.f32.gmra.mxu2 %vm224_vm0, %v335_v20  ;;  %592 = vmatmul.msk.f32.gmra.mxu0 %vm224_vm0, %v401_v17 }
  0x37   : > { %614 = vmatmul.msk.f32.gmra.mxu3 %vm224_vm0, %v403_v21  ;;  %598 = vmatmul.msk.f32.gmra.mxu1 %vm224_vm0, %v333_v16 }
  0x3e   : > { %607 = vmatmul.msk.f32.gmra.mxu2 %vm224_vm0, %v336_v22  ;;  %593 = vmatmul.msk.f32.gmra.mxu0 %vm224_vm0, %v402_v19 }
  0x3f   : > { %615 = vmatmul.msk.f32.gmra.mxu3 %vm224_vm0, %v404_v23  ;;  %599 = vmatmul.msk.f32.gmra.mxu1 %vm224_vm0, %v334_v18 }
  0x93   : > { %v260_v24 = vpop.f32.mrf.mxu0 }
  0x94   : > { %v313_v25 = vpop.f32.mrf.mxu1 }
  0x95   : > { %v314_v26 = vadd.f32 %v313_v25, %v260_v24 }
  0x99   : > { %v375_v27 = vpop.f32.mrf.mxu2 }
  0x9a   : > { %v443_v28 = vpop.f32.mrf.mxu3  ;;  %v393_v29 = vadd.f32 %v375_v27, %v314_v26 }
  0x9b   : > { %v263_v32 = vpop.f32.mrf.mxu0 }
  0x9c   : > { %v461_v31 = vadd.f32 %v443_v28, %v393_v29  ;;  %v316_v33 = vpop.f32.mrf.mxu1 }
  0x9d   : > { %v317_v35 = vadd.f32 %v316_v33, %v263_v32 }
  0x9e   : > { %v471_v34 = vadd.f32 %v662_v30, %v461_v31 }
  0xa0   : > { %478 = vst.msk [vmem:[%s839_s28] sm:$0xff] %vm477_vm1, %v471_v34 }
  0xa1   : > { %v378_v36 = vpop.f32.mrf.mxu2 }
  0xa2   : > { %v446_v37 = vpop.f32.mrf.mxu3  ;;  %v394_v38 = vadd.f32 %v378_v36, %v317_v35 }
  0xa3   : > { %v266_v40 = vpop.f32.mrf.mxu0 }
  0xa4   : > { %v462_v39 = vadd.f32 %v446_v37, %v394_v38  ;;  %v319_v41 = vpop.f32.mrf.mxu1 }
  0xa5   : > { %v320_v43 = vadd.f32 %v319_v41, %v266_v40 }
  0xa6   : > { %v472_v42 = vadd.f32 %v662_v30, %v462_v39 }
  0xa8   : > { %479 = vst.msk [vmem:[%s839_s28 + $0x8] sm:$0xff] %vm477_vm1, %v472_v42 }
  0xa9   : > { %v381_v44 = vpop.f32.mrf.mxu2 }
  0xaa   : > { %v449_v45 = vpop.f32.mrf.mxu3  ;;  %v395_v46 = vadd.f32 %v381_v44, %v320_v43 }
  0xab   : > { %v269_v48 = vpop.f32.mrf.mxu0 }
  0xac   : > { %v463_v47 = vadd.f32 %v449_v45, %v395_v46  ;;  %v322_v49 = vpop.f32.mrf.mxu1 }
  0xad   : > { %v323_v51 = vadd.f32 %v322_v49, %v269_v48 }
  0xae   : > { %v473_v50 = vadd.f32 %v662_v30, %v463_v47 }
  0xb0   : > { %480 = vst.msk [vmem:[%s839_s28 + $0x10] sm:$0xff] %vm477_vm1, %v473_v50 }
  0xb1   : > { %v384_v52 = vpop.f32.mrf.mxu2 }
  0xb2   : > { %v452_v53 = vpop.f32.mrf.mxu3  ;;  %v396_v54 = vadd.f32 %v384_v52, %v323_v51 }
  0xb3   : > { %v272_v56 = vpop.f32.mrf.mxu0 }
  0xb4   : > { %v464_v55 = vadd.f32 %v452_v53, %v396_v54  ;;  %v325_v57 = vpop.f32.mrf.mxu1 }
  0xb5   : > { %v326_v59 = vadd.f32 %v325_v57, %v272_v56 }
  0xb6   : > { %v474_v58 = vadd.f32 %v662_v30, %v464_v55 }
  0xb8   : > { %481 = vst.msk [vmem:[%s839_s28 + $0x18] sm:$0xff] %vm477_vm1, %v474_v58 }
  0xb9   : > { %v387_v60 = vpop.f32.mrf.mxu2 }
  0xba   : > { %v455_v61 = vpop.f32.mrf.mxu3  ;;  %v397_v62 = vadd.f32 %v387_v60, %v326_v59 }
  0xbb   : > { %v275_v0 = vpop.f32.mrf.mxu0 }
  0xbc   : > { %v465_v63 = vadd.f32 %v455_v61, %v397_v62  ;;  %v328_v1 = vpop.f32.mrf.mxu1 }
  0xbd   : > { %v329_v3 = vadd.f32 %v328_v1, %v275_v0 }
  0xbe   : > { %v475_v2 = vadd.f32 %v662_v30, %v465_v63 }
  0xc0   : > { %482 = vst.msk [vmem:[%s839_s28 + $0x20] sm:$0xff] %vm477_vm1, %v475_v2 }
  0xc1   : > { %v390_v4 = vpop.f32.mrf.mxu2 }
  0xc2   : > { %v458_v5 = vpop.f32.mrf.mxu3  ;;  %v398_v6 = vadd.f32 %v390_v4, %v329_v3 }
  0xc4   : > { %v466_v7 = vadd.f32 %v458_v5, %v398_v6 }
  0xc6   : > { %v476_v8 = vadd.f32 %v662_v30, %v466_v7 }
  0xc8   : > { %483 = vst.msk [vmem:[%s839_s28 + $0x28] sm:$0xff] %vm477_vm1, %v476_v8 }
  0xc9 PF: > { %s13_s16 = sadd.s32 1, %s701_s16   ;;  %s872_s12 = smov %s693_s14 }
  0xca   : > { %p10_p7 = scmp.ge.s32.totalorder %s13_s16, 8   ;;  %s873_s13 = smov %s697_s15 }
  0xcb   : > { %s874_s14 = smov %s877_s17  ;;  %s875_s15 = smov %s881_s18 }
  0xcc   :  { %12 = sbr.rel (!%p10_p7) target bundleno = 3 (0x3), region = 65 }

</bundles_post_ra>
